<compile_context>
chip_gen: v6e
topology: v6e:2x2x1
jax: 0.10.0
libtpu: 0.0.40
codegen_flags: <defaults>
</compile_context>

<pallas_src>
import jax
import jax.numpy as jnp
from jax.experimental import pallas as pl
from jax.experimental.pallas import tpu as pltpu

IN_FEATURES = 128
OUT_FEATURES = 10
W_PAD = 128       # lane-dense MXU width for the resident weight tile
TB_MAX = 4096     # batch tile; double-buffered x blocks = 2 x 2 MiB, tiny vs VMEM


def linear_kernel(x_ref, w_ref, b_ref, o_ref):
    # x_ref: (tb, 128) f32      w_ref: (128, 128) bf16 (cols 10..127 are zero)
    # b_ref: (1, 10)  f32       o_ref: (tb, 10)   out dtype
    x_bf = x_ref[...].astype(jnp.bfloat16)          # cast in-kernel, hides under DMA
    acc = jnp.dot(x_bf, w_ref[...], preferred_element_type=jnp.float32)
    o_ref[...] = (acc[:, :OUT_FEATURES] + b_ref[...]).astype(o_ref.dtype)


def prepare_params(w_t, b):
    """One-time layout prep (call at init, NOT per forward):
    bf16 weight zero-padded to 128 lanes, f32 bias as a (1, 10) row."""
    w_pad = jnp.zeros((IN_FEATURES, W_PAD), jnp.bfloat16)
    w_pad = w_pad.at[:, :OUT_FEATURES].set(w_t.astype(jnp.bfloat16))
    b_row = jnp.reshape(b, (1, OUT_FEATURES)).astype(jnp.float32)
    return w_pad, b_row


def classifier_forward(x, w_pad, b_row):
    """x: (B, 128) f32, w_pad: (128, 128) bf16, b_row: (1, 10) f32 -> (B, 10)."""
    B = x.shape[0]
    out_dtype = x.dtype

    # Batch tile: multiple of 8 sublanes, sized to minimize ragged waste,
    # capped at TB_MAX.  No wrapper-side padding of x.
    tb = min(TB_MAX, ((B + 7) // 8) * 8)
    grid = (pl.cdiv(B, tb),)

    cost = pl.CostEstimate(
        flops=2 * B * IN_FEATURES * W_PAD,
        transcendentals=0,
        bytes_accessed=(x.size * x.dtype.itemsize        # f32 x read
                        + w_pad.size * 2                 # bf16 weight read
                        + b_row.size * 4                 # f32 bias read
                        + B * OUT_FEATURES * jnp.dtype(out_dtype).itemsize),
    )

    out = pl.pallas_call(
        linear_kernel,
        out_shape=jax.ShapeDtypeStruct((B, OUT_FEATURES), out_dtype),
        grid=grid,
        in_specs=[
            pl.BlockSpec((tb, IN_FEATURES), lambda i: (i, 0)),        # x tile
            pl.BlockSpec((IN_FEATURES, W_PAD), lambda i: (0, 0)),     # W resident
            pl.BlockSpec((1, OUT_FEATURES), lambda i: (0, 0)),        # b resident
        ],
        # Last block dim (10) equals the full array dim -> legal block shape;
        # narrow store avoids the padded-f32 writeback + post-slice pass.
        out_specs=pl.BlockSpec((tb, OUT_FEATURES), lambda i: (i, 0)),
        compiler_params=pltpu.CompilerParams(
            dimension_semantics=("parallel",)),
        cost_estimate=cost,
    )(x, w_pad, b_row)

    return out


def init_params(key):
    # Mimic nn.Linear default init: U(-1/sqrt(in), 1/sqrt(in)).
    kw, kb = jax.random.split(key)
    bound = 1.0 / jnp.sqrt(jnp.float32(IN_FEATURES))
    # PyTorch stores weight as (out, in); we keep the transposed (in, out).
    w_t = jax.random.uniform(
        kw, (IN_FEATURES, OUT_FEATURES), jnp.float32, -bound, bound)
    b = jax.random.uniform(kb, (OUT_FEATURES,), jnp.float32, -bound, bound)
    return w_t, b


if __name__ == "__main__":
    key = jax.random.PRNGKey(0)
    k_x1, k_x2, k_p = jax.random.split(key, 3)

    w_t, bias = init_params(k_p)
    w_pad, b_row = prepare_params(w_t, bias)   # one-time layout prep

    # Case 1: small, tile-aligned batch.
    B1 = 8
    x1 = jax.random.normal(k_x1, (B1, IN_FEATURES), jnp.float32)
    out1 = jax.block_until_ready(classifier_forward(x1, w_pad, b_row))

    # Case 2: ragged batch (not a multiple of 8) — exercises the masked last block.
    B2 = 50
    x2 = jax.random.normal(k_x2, (B2, IN_FEATURES), jnp.float32)
    out2 = jax.block_until_ready(classifier_forward(x2, w_pad, b_row))

    # Reference: same bf16 input/weight precision, f32 accumulation.
    def ref(x):
        xb = x.astype(jnp.bfloat16).astype(jnp.float32)
        wb = w_t.astype(jnp.bfloat16).astype(jnp.float32)
        return xb @ wb + jnp.reshape(bias, (1, -1))

    assert out1.shape == (B1, OUT_FEATURES)
    assert out2.shape == (B2, OUT_FEATURES)
    assert jnp.allclose(out1, ref(x1), atol=2e-2, rtol=2e-2)
    assert jnp.allclose(out2, ref(x2), atol=2e-2, rtol=2e-2)

    print("KERNEL_OK")
</pallas_src>

<mosaic_0001>
module attributes {stable_mosaic.version = 11 : i64} {
  func.func @linear_kernel(%arg0: i32, %arg1: memref<8x128xf32, #tpu.memory_space<vmem>>, %arg2: memref<128x128xbf16, #tpu.memory_space<vmem>>, %arg3: memref<1x10xf32, #tpu.memory_space<vmem>>, %arg4: memref<8x10xf32, #tpu.memory_space<vmem>>) attributes {dimension_semantics = [#tpu.dimension_semantics<parallel>], iteration_bounds = array<i64: 1>, scalar_prefetch = 0 : i64, scratch_operands = 0 : i64, tpu.core_type = #tpu.core_type<tc>, window_params = [{transform_indices = @transform_0, window_bounds = array<i64: 8, 128>}, {pipeline_mode = #tpu.pipeline_mode<synchronous>, transform_indices = @transform_1, window_bounds = array<i64: 128, 128>}, {pipeline_mode = #tpu.pipeline_mode<synchronous>, transform_indices = @transform_2, window_bounds = array<i64: 1, 10>}, {transform_indices = @transform_3, window_bounds = array<i64: 8, 10>}]} {
    %c0 = arith.constant 0 : index
    %c0_0 = arith.constant 0 : index
    %0 = vector.load %arg1[%c0, %c0_0] : memref<8x128xf32, #tpu.memory_space<vmem>>, vector<8x128xf32>
    %1 = arith.truncf %0 : vector<8x128xf32> to vector<8x128xbf16>
    %c0_1 = arith.constant 0 : index
    %c0_2 = arith.constant 0 : index
    %2 = vector.load %arg2[%c0_1, %c0_2] : memref<128x128xbf16, #tpu.memory_space<vmem>>, vector<128x128xbf16>
    %cst = arith.constant dense<0.000000e+00> : vector<8x128xf32>
    %3 = tpu.matmul %1, %2, %cst {dimension_numbers = #tpu.dot_dimension_numbers<[1], [0], [0], [1], [0, 0, 1, 1], [], []>} : vector<8x128xbf16>, vector<128x128xbf16>, vector<8x128xf32> -> vector<8x128xf32>
    %4 = vector.extract_strided_slice %3 {offsets = [0, 0], sizes = [8, 10], strides = [1, 1]} : vector<8x128xf32> to vector<8x10xf32>
    %c0_3 = arith.constant 0 : index
    %c0_4 = arith.constant 0 : index
    %5 = vector.load %arg3[%c0_3, %c0_4] : memref<1x10xf32, #tpu.memory_space<vmem>>, vector<1x10xf32>
    %6 = vector.broadcast %5 : vector<1x10xf32> to vector<8x10xf32>
    %7 = arith.addf %4, %6 : vector<8x10xf32>
    %c0_5 = arith.constant 0 : index
    %c0_6 = arith.constant 0 : index
    %8 = vector.load %arg4[%c0_5, %c0_6] : memref<8x10xf32, #tpu.memory_space<vmem>>, vector<8x10xf32>
    tpu.vector_store %arg4[%c0_5, %c0_6], %7 {strides = array<i32>} : memref<8x10xf32, #tpu.memory_space<vmem>>, vector<8x10xf32>,
    return
  }
  func.func @transform_0(%arg0: i32) -> (i32, i32) {
    %c0_i32 = arith.constant 0 : i32
    %c0_i32_0 = arith.constant 0 : i32
    return %arg0, %c0_i32 : i32, i32
  }
  func.func @transform_1(%arg0: i32) -> (i32, i32) {
    %c0_i32 = arith.constant 0 : i32
    %c0_i32_0 = arith.constant 0 : i32
    %c0_i32_1 = arith.constant 0 : i32
    return %c0_i32, %c0_i32_0 : i32, i32
  }
  func.func @transform_2(%arg0: i32) -> (i32, i32) {
    %c0_i32 = arith.constant 0 : i32
    %c0_i32_0 = arith.constant 0 : i32
    %c0_i32_1 = arith.constant 0 : i32
    return %c0_i32, %c0_i32_0 : i32, i32
  }
  func.func @transform_3(%arg0: i32) -> (i32, i32) {
    %c0_i32 = arith.constant 0 : i32
    %c0_i32_0 = arith.constant 0 : i32
    return %arg0, %c0_i32 : i32, i32
  }
}

</mosaic_0001>

<bundles_post_ra>
// kernel: tpu_custom_call.1
= control target key start
LH: loop header
LB: loop body
LE: loop exit
PB: predicated region body
PF: predicated region fallthrough
CT: control target
= control target key end

     0   :  { %8 = vsyncpa [#allocation3], 0  ;;  %s332_s0 = inlined_call_operand.hbm [shape: f32[8,128], index: 0, kind: input, shape index: {}]   ;;  %s333_s1 = inlined_call_operand.hbm [shape: bf16[128,128], index: 1, kind: input, shape index: {}]   ;;  %s334_s2 = inlined_call_operand.vmem [shape: f32[1,10], index: 2, kind: input, shape index: {}]   ;;  %s335_s3 = inlined_call_operand.hbm [shape: f32[8,10], index: 3, kind: output, shape index: {}]  }
   0x1   :  { %9 = vsyncpa [#allocation6], 0 }
   0x2   :  { %10 = vsyncpa [#allocation4], 0  ;;  %s293_s12 = smov [#allocation2]   ;;  %s294_s14 = smov [#allocation5]  }
   0x3   :  { %s17_s13 = sshll.u32 %s293_s12, 4  ;;  %s26_s15 = sshll.u32 %s294_s14, 4  ;;  %s18_s13 = int_to_ptr.vmem [resolvable:$true] %s17_s13  ;;  %s27_s15 = int_to_ptr.vmem [resolvable:$true] %s26_s15 }
   0x4   :  { %s235_s16 = scalar_lea.vmem %s18_s13, 128  ;;  %p240_p1 = scmp.lt.s32.totalorder %s18_s13, %s18_s13 }
   0x5   :  { %p236_p0 = scmp.ne.s32.totalorder %s18_s13, %s235_s16  ;;  %p241_p2 = scmp.lt.s32.totalorder %s235_s16, %s235_s16 }
   0x7   :  { %p242_p3 = por %p241_p2, %p240_p1 }
   0x9   :  { %p243_p4 = pnand %p242_p3, %p236_p0 }
   0xb   :  { %246 = shalt.err (!%p243_p4)
}
   0xc   :  { %20 = dma.hbm_to_vmem [thread:$0]  %s332_s0, 128, %s18_s13, [#allocation3]  }
   0xd   :  { %s255_s19 = scalar_lea.vmem %s27_s15, 1024  ;;  %p260_p6 = scmp.lt.s32.totalorder %s27_s15, %s27_s15 }
   0xe   :  { %p256_p5 = scmp.ne.s32.totalorder %s27_s15, %s255_s19  ;;  %p261_p7 = scmp.lt.s32.totalorder %s255_s19, %s255_s19 }
  0x10   :  { %p262_p8 = por %p261_p7, %p260_p6 }
  0x12   :  { %p263_p9 = pnand %p262_p8, %p256_p5 }
  0x14   :  { %266 = shalt.err (!%p263_p9)
}
  0x15   :  { %s295_s20 = smov 64   ;;  %s296_s21 = smov 4  }
  0x16   :  { %32 = dma.hbm_to_vmem [thread:$0]  %s333_s1, 1024, %s27_s15, [#allocation6], %s295_s20, %s295_s20, %s296_s21  }
  0x17   :  { %287 = dma.done.wait [#allocation3], 128  }
  0x18   :  { %288 = vsyncadd [#allocation3], 4294967168 }
  0x19   :  { %289 = dma.done.wait [#allocation6], 1024  }
  0x1a   :  { %290 = vsyncadd [#allocation6], 4294966272  ;;  %v297_v0 = vmov 0.0   ;;  %vm298_vm0 = vmmov 0   ;;  %v219_v1 = vld [vmem:[#allocation5 + $0x38] sm:$0xff]   ;;  %v220_v2 = vld [vmem:[#allocation5 + $0x30] sm:$0xff]  }
  0x1b   :  { %192 = vmatprep.subr.bf16.mxu0 %v297_v0  ;;  %208 = vmatprep.mubr.msk.bf16.mxu0 %vm298_vm0, %v297_v0  ;;  %v221_v3 = vld [vmem:[#allocation5 + $0x28] sm:$0xff]   ;;  %v222_v4 = vld [vmem:[#allocation5 + $0x20] sm:$0xff]   ;;  %v223_v5 = vld [vmem:[#allocation5 + $0x18] sm:$0xff]   ;;  %s299_s24 = smov [#allocation7]   ;;  %vm156_vm1 = vcmask 80896  }
  0x1c   :  { %193 = vmatpush3.bf16.msra.mxu0 %v219_v1  ;;  %v224_v6 = vld [vmem:[#allocation5 + $0x10] sm:$0xff]   ;;  %v225_v7 = vld [vmem:[#allocation5 + $0x8] sm:$0xff]   ;;  %v226_v8 = vld [vmem:[#allocation5] sm:$0xff]   ;;  %s164_s25 = sshll.u32 %s299_s24, 4  ;;  %s165_s25 = int_to_ptr.vmem [resolvable:$true] %s164_s25 }
  0x1d   :  { %194 = vmatprep.subr.bf16.mxu0 %v297_v0  ;;  %v42_v9 = vld [vmem:[#allocation2] sm:$0xff]  ;;  %s267_s26 = scalar_lea.vmem %s165_s25, 128  ;;  %p272_p11 = scmp.lt.s32.totalorder %s165_s25, %s165_s25 }
  0x1e   :  { %v43_v10 = vpack.c.bf16 %v42_v9, %v42_v9  ;;  %v182_v11 = vld [vmem:[%s334_s2] ss:$0 sm:$0xff]  ;;  %p268_p10 = scmp.ne.s32.totalorder %s165_s25, %s267_s26  ;;  %p273_p12 = scmp.lt.s32.totalorder %s267_s26, %s267_s26 }
  0x20   :  { %195 = vmatpush3.bf16.msra.mxu0 %v220_v2  ;;  %p274_p13 = por %p273_p12, %p272_p11 }
  0x21   :  { %196 = vmatprep.subr.bf16.mxu0 %v297_v0 }
  0x22   :  { %p275_p0 = pnand %p274_p13, %p268_p10 }
  0x24   :  { %197 = vmatpush3.bf16.msra.mxu0 %v221_v3 }
  0x25   :  { %198 = vmatprep.subr.bf16.mxu0 %v297_v0 }
  0x28   :  { %199 = vmatpush3.bf16.msra.mxu0 %v222_v4 }
  0x29   :  { %200 = vmatprep.subr.bf16.mxu0 %v297_v0 }
  0x2c   :  { %201 = vmatpush3.bf16.msra.mxu0 %v223_v5 }
  0x2d   :  { %202 = vmatprep.subr.bf16.mxu0 %v297_v0 }
  0x30   :  { %203 = vmatpush3.bf16.msra.mxu0 %v224_v6 }
  0x31   :  { %204 = vmatprep.subr.bf16.mxu0 %v297_v0 }
  0x34   :  { %205 = vmatpush3.bf16.msra.mxu0 %v225_v7 }
  0x35   :  { %206 = vmatprep.subr.bf16.mxu0 %v297_v0 }
  0x38   :  { %207 = vmatpush3.bf16.msra.mxu0 %v226_v8 }
  0x3b   :  { %209 = vmatmul.mubr.bf16.vlgmr.msra.gmra.mxu0 %v43_v10 }
  0xfb   :  { %v142_v12 = vpop.f32.mrf.mxu0 }
  0xfc   :  { %v155_v13 = vadd.f32 %v182_v11, %v142_v12 }
  0xfd   :  { %v210_v14 = vpop.f32.mrf.mxu0 }
  0xfe   :  { %157 = vst.msk [vmem:[#allocation7] sm:$0xff] %vm156_vm1, %v155_v13 }
  0xff   :  { %v145_v15 = vpop.f32.mrf.mxu0 }
 0x100   :  { %278 = shalt.err (!%p275_p0)
}
 0x101   :  { %167 = dma.vmem_to_hbm [thread:$0]  %s165_s25, 128, %s335_s3, [#allocation4]   ;;  %v211_v16 = vpop.f32.mrf.mxu0 }
 0x102   :  { %291 = dma.done.wait [#allocation4], 128  }
 0x103   :  { %292 = vsyncadd [#allocation4], 4294967168 }
 0x104   :  { %171 = vsyncpa [#allocation3], 1 }
 0x105   :  { %172 = vsyncpa [#allocation6], 1 }
 0x106   :  { %173 = vsyncpa [#allocation4], 1 }

</bundles_post_ra>
